<compile_context>
chip_gen: v5e
topology: v5e:2x2
jax: 0.10.0
libtpu: 0.0.40
codegen_flags: <defaults>
</compile_context>

<pallas_src>
import jax
import jax.numpy as jnp
from jax.experimental import pallas as pl
from jax.experimental.pallas import tpu as pltpu


# ---------------------------------------------------------------------------
# Kernels
# ---------------------------------------------------------------------------
def _tf_kernel(x_ref, o_ref):
    # 'tensorflow' mode: x * 2 - 1 (constants baked in, no extra inputs).
    o_ref[...] = (x_ref[...] * 2.0 - 1.0).astype(o_ref.dtype)


def _affine_kernel(x_ref, scale_ref, bias_ref, o_ref):
    # 'torch' mode: fused x * (1/std) + (-mean/std).  scale/bias are float32
    # (rb, 1) columns or (1, cb) rows; broadcasting + dtype promotion computes
    # in f32 and the result is cast back to the output dtype.
    o_ref[...] = (x_ref[...] * scale_ref[...] + bias_ref[...]).astype(o_ref.dtype)


# ---------------------------------------------------------------------------
# Tiling helpers (pure Python, trace time)
# ---------------------------------------------------------------------------
_TF_COL_CANDIDATES = (4096, 2048, 1024, 512, 256, 128)
_TARGET_BYTES = None


def _target_block_bytes():
    """~VMEM/16 per block (clamped to [2, 6] MiB): 4 MiB v7x, 6 MiB v5e/v6e."""
    global _TARGET_BYTES
    if _TARGET_BYTES is None:
        try:
            vmem = int(pltpu.get_tpu_info().vmem_capacity_bytes)
        except Exception:
            vmem = 64 * 1024 * 1024
        _TARGET_BYTES = int(min(6 << 20, max(2 << 20, vmem // 16)))
    return _TARGET_BYTES


def _compiler_params(n_grid_axes, target):
    # 2x(in) + 2x(out) block buffers must fit; raise the scoped-VMEM limit so
    # v5e's 16 MiB default does not force degraded buffering.  The limit stays
    # well under every generation's physical VMEM (64 MiB v7x, 128 MiB else).
    return pltpu.CompilerParams(
        dimension_semantics=("parallel",) * n_grid_axes,
        vmem_limit_bytes=max(32 << 20, 8 * target),
    )


def _sublane(dtype):
    # Sub-32-bit dtypes pack 2/4 rows per sublane: 8 f32 / 16 bf16 / 32 int8.
    return max(8, 32 // jnp.dtype(dtype).itemsize)


def _col_block(cols, itemsize, sublane, target):
    """Lane (last-dim) block: full dim when small, else a big multiple of 128."""
    max_cols = max(128, target // (sublane * itemsize))
    if cols <= max_cols:
        return cols                       # full dim -> always legal
    cb = (max_cols // 128) * 128
    if cols % 128 == 0:
        while cols % cb:                  # keep the final block unmasked
            cb -= 128
    return cb


def _row_block(rows, col_block, itemsize, sublane, target):
    """Sublane (2nd-minor) block: biggest multiple of `sublane` <= target."""
    row_bytes = max(1, col_block * itemsize)
    max_rows = max(sublane, (target // row_bytes) // sublane * sublane)
    if rows > max_rows:
        return max_rows
    # Whole row extent fits one block: split mid-sized arrays into >=2 row
    # blocks so the DMA pipeline has steps to overlap and a v7x core pair can
    # shard the leading "parallel" axis.
    if rows >= 2 * sublane and rows * row_bytes > (2 << 20):
        half = ((rows + 1) // 2 + sublane - 1) // sublane * sublane
        if half < rows:
            return half
    return rows


def _tf_cols(total, sublane):
    """Largest lane-dense column count dividing `total`, preferring >=sublane rows."""
    best = None
    for c in _TF_COL_CANDIDATES:
        if total % c == 0:
            if best is None:
                best = c
            if total // c >= sublane:
                return c
    return best  # may be None (total not a multiple of 128)


# ---------------------------------------------------------------------------
# Launchers
# ---------------------------------------------------------------------------
def _launch_tf(x2d, out_dtype, target):
    rows, cols = x2d.shape
    itemsize = jnp.dtype(x2d.dtype).itemsize
    sub = _sublane(x2d.dtype)
    cb = _col_block(cols, itemsize, sub, target)
    rb = _row_block(rows, cb, itemsize, sub, target)
    grid = (pl.cdiv(rows, rb), pl.cdiv(cols, cb))
    return pl.pallas_call(
        _tf_kernel,
        out_shape=jax.ShapeDtypeStruct((rows, cols), out_dtype),
        grid=grid,
        in_specs=[pl.BlockSpec((rb, cb), lambda i, j: (i, j))],
        out_specs=pl.BlockSpec((rb, cb), lambda i, j: (i, j)),
        compiler_params=_compiler_params(len(grid), target),
    )(x2d)


def _launch_affine(x2d, scale2d, bias2d, out_dtype, target):
    rows, cols = x2d.shape
    itemsize = jnp.dtype(x2d.dtype).itemsize
    sub = _sublane(x2d.dtype)
    cb = _col_block(cols, itemsize, sub, target)
    rb = _row_block(rows, cb, itemsize, sub, target)
    grid = (pl.cdiv(rows, rb), pl.cdiv(cols, cb))
    if scale2d.shape[0] == 1:
        # (1, cols) row broadcast across sublanes.
        sb_spec = pl.BlockSpec((1, cb), lambda i, j: (0, j))
    else:
        # (rows, 1) column broadcast across lanes.
        sb_spec = pl.BlockSpec((rb, 1), lambda i, j: (i, 0))
    return pl.pallas_call(
        _affine_kernel,
        out_shape=jax.ShapeDtypeStruct((rows, cols), out_dtype),
        grid=grid,
        in_specs=[pl.BlockSpec((rb, cb), lambda i, j: (i, j)), sb_spec, sb_spec],
        out_specs=pl.BlockSpec((rb, cb), lambda i, j: (i, j)),
        compiler_params=_compiler_params(len(grid), target),
    )(x2d, scale2d, bias2d)


# ---------------------------------------------------------------------------
# 'tensorflow' mode: x * 2 - 1 over a lane-dense, tiled 2-D view
# ---------------------------------------------------------------------------
def tf_normalize_tensorflow(x):
    orig_shape = x.shape
    xf = x if jnp.issubdtype(x.dtype, jnp.floating) else x.astype(jnp.float32)
    total = xf.size
    if total == 0:
        return xf
    target = _target_block_bytes()
    flat = xf.reshape(-1)
    cols = _tf_cols(total, _sublane(xf.dtype))
    if cols is not None:
        x2d = flat.reshape(total // cols, cols)
    else:
        # numel not a multiple of 128: single pass over the natural
        # (leading, last_dim) view -- no pad, no trailing slice (saves two
        # full HBM passes vs the padded path).  Last block dim = full array
        # dim, so the BlockSpec stays legal.
        last = orig_shape[-1] if xf.ndim >= 2 else total
        x2d = flat.reshape(total // last, last)
    out2d = _launch_tf(x2d, xf.dtype, target)
    return out2d.reshape(orig_shape)


# ---------------------------------------------------------------------------
# 'torch' mode: (x[:, c] - mean[c]) / std[c] as fused x*scale + bias
# ---------------------------------------------------------------------------
def tf_normalize_torch(x, mean, std):
    if x.ndim < 2:
        raise ValueError("torch mode expects a channel axis at dim 1")
    shape = x.shape
    N, C = shape[0], shape[1]
    S = 1
    for d in shape[2:]:
        S *= d
    xf = x if jnp.issubdtype(x.dtype, jnp.floating) else x.astype(jnp.float32)
    target = _target_block_bytes()

    # Per-channel scalars in float32 (precision fix for bf16/fp16 inputs);
    # the divide is hoisted here so the kernel is a single fused FMA.
    mean32 = jnp.broadcast_to(jnp.asarray(mean, dtype=jnp.float32), (C,))
    std32 = jnp.broadcast_to(jnp.asarray(std, dtype=jnp.float32), (C,))
    inv = 1.0 / std32
    bias = -mean32 * inv

    if S % 128 != 0 and (C * S) % 128 == 0:
        # Lane-dense fallback (e.g. 7x7 feature maps): collapse channels into
        # the lane axis and broadcast a (1, C*S) scale/bias row across rows.
        x2d = xf.reshape(N, C * S)
        scale2d = jnp.repeat(inv, S).reshape(1, C * S)
        bias2d = jnp.repeat(bias, S).reshape(1, C * S)
    else:
        # Natural (N*C, S) view with per-row scale/bias columns broadcast
        # across the lane dimension.
        x2d = xf.reshape(N * C, S)
        scale2d = jnp.tile(inv, N).reshape(N * C, 1)
        bias2d = jnp.tile(bias, N).reshape(N * C, 1)

    out2d = _launch_affine(x2d, scale2d, bias2d, xf.dtype, target)
    return out2d.reshape(shape)


# ---------------------------------------------------------------------------
# Module-equivalent wrapper
# ---------------------------------------------------------------------------
def tf_normalize(x, mean=0, std=1, mode="tensorflow"):
    if mode == "tensorflow":
        return tf_normalize_tensorflow(x)
    elif mode == "torch":
        return tf_normalize_torch(x, mean, std)
    else:
        # Any other mode is identity (the PyTorch module just clones).
        return x


if __name__ == "__main__":
    key = jax.random.PRNGKey(0)
    N, C, H, W = 2, 4, 16, 16
    x = jax.random.uniform(key, (N, C, H, W), dtype=jnp.float32)

    # Default mode: 'tensorflow'
    out_tf = jax.block_until_ready(tf_normalize(x, mode="tensorflow"))
    ref_tf = x * 2.0 - 1.0
    assert out_tf.shape == x.shape and out_tf.dtype == x.dtype
    assert jnp.allclose(out_tf, ref_tf, atol=1e-6), "tensorflow-mode mismatch"

    # 'tensorflow' mode on a shape whose size is not a multiple of 128
    # (exercises the unpadded single-pass fallback).
    x_odd = jax.random.uniform(jax.random.PRNGKey(1), (2, 3, 5, 7), dtype=jnp.float32)
    out_odd = jax.block_until_ready(tf_normalize(x_odd, mode="tensorflow"))
    assert jnp.allclose(out_odd, x_odd * 2.0 - 1.0, atol=1e-6), "odd-shape mismatch"

    # 'torch' mode with deterministic per-channel params.
    mean = jnp.array([0.485, 0.456, 0.406, 0.5], dtype=jnp.float32)
    std = jnp.array([0.229, 0.224, 0.225, 0.25], dtype=jnp.float32)
    out_t = jax.block_until_ready(tf_normalize(x, mean=mean, std=std, mode="torch"))
    ref_t = (x - mean[None, :, None, None]) / std[None, :, None, None]
    assert out_t.shape == x.shape and out_t.dtype == x.dtype
    assert jnp.allclose(out_t, ref_t, atol=1e-5), "torch-mode mismatch"

    # 'torch' mode with default scalar mean=0 / std=1.
    out_id = jax.block_until_ready(tf_normalize(x, mode="torch"))
    assert jnp.allclose(out_id, x, atol=1e-6), "torch-mode scalar-default mismatch"

    # 'torch' mode on bf16 input (exercises the float32 scale/bias path and
    # bf16 sublane rounding).
    x_bf = x.astype(jnp.bfloat16)
    out_bf = jax.block_until_ready(tf_normalize(x_bf, mean=mean, std=std, mode="torch"))
    ref_bf = ((x_bf.astype(jnp.float32) - mean[None, :, None, None])
              / std[None, :, None, None]).astype(jnp.bfloat16)
    assert out_bf.dtype == jnp.bfloat16
    assert jnp.allclose(out_bf.astype(jnp.float32), ref_bf.astype(jnp.float32),
                        atol=2e-2), "torch-mode bf16 mismatch"

    print("KERNEL_OK")
</pallas_src>

<mosaic_0001>
module attributes {stable_mosaic.version = 11 : i64} {
  func.func @_tf_kernel(%arg0: i32, %arg1: i32, %arg2: memref<8x256xf32, #tpu.memory_space<vmem>>, %arg3: memref<8x256xf32, #tpu.memory_space<vmem>>) attributes {dimension_semantics = [#tpu.dimension_semantics<parallel>, #tpu.dimension_semantics<parallel>], iteration_bounds = array<i64: 1, 1>, scalar_prefetch = 0 : i64, scratch_operands = 0 : i64, tpu.core_type = #tpu.core_type<tc>, window_params = [{transform_indices = @transform_0, window_bounds = array<i64: 8, 256>}, {transform_indices = @transform_1, window_bounds = array<i64: 8, 256>}]} {
    %c0 = arith.constant 0 : index
    %c0_0 = arith.constant 0 : index
    %0 = vector.load %arg2[%c0, %c0_0] : memref<8x256xf32, #tpu.memory_space<vmem>>, vector<8x256xf32>
    %cst = arith.constant 2.000000e+00 : f32
    %1 = vector.broadcast %cst : f32 to vector<8x256xf32>
    %2 = arith.mulf %0, %1 : vector<8x256xf32>
    %cst_1 = arith.constant 1.000000e+00 : f32
    %3 = vector.broadcast %cst_1 : f32 to vector<8x256xf32>
    %4 = arith.subf %2, %3 : vector<8x256xf32>
    %c0_2 = arith.constant 0 : index
    %c0_3 = arith.constant 0 : index
    %5 = vector.load %arg3[%c0_2, %c0_3] : memref<8x256xf32, #tpu.memory_space<vmem>>, vector<8x256xf32>
    tpu.vector_store %arg3[%c0_2, %c0_3], %4 {strides = array<i32>} : memref<8x256xf32, #tpu.memory_space<vmem>>, vector<8x256xf32>,
    return
  }
  func.func @transform_0(%arg0: i32, %arg1: i32) -> (i32, i32) {
    %c0_i32 = arith.constant 0 : i32
    return %arg0, %arg1 : i32, i32
  }
  func.func @transform_1(%arg0: i32, %arg1: i32) -> (i32, i32) {
    %c0_i32 = arith.constant 0 : i32
    return %arg0, %arg1 : i32, i32
  }
}

</mosaic_0001>

<bundles_post_ra>
// kernel: tpu_custom_call.1
= control target key start
LH: loop header
LB: loop body
LE: loop exit
PB: predicated region body
PF: predicated region fallthrough
CT: control target
= control target key end

     0   :  { %6 = vsyncpa [#allocation3], 0  ;;  %s122_s0 = inlined_call_operand.hbm [shape: f32[8,256], index: 0, kind: input, shape index: {}]   ;;  %s123_s1 = inlined_call_operand.hbm [shape: f32[8,256], index: 1, kind: output, shape index: {}]  }
   0x1   :  { %7 = vsyncpa [#allocation4], 0  ;;  %s13_s8 = sshll.u32 %s122_s0, 4  ;;  %s104_s9 = smov [#allocation2]   ;;  %s14_s8 = int_to_ptr.hbm [resolvable:$true] %s13_s8 }
   0x2   :  { %s15_s10 = sshll.u32 %s104_s9, 4  ;;  %s16_s10 = int_to_ptr.vmem [resolvable:$true] %s15_s10 }
   0x3   :  { %18 = dma.hbm_to_vmem [thread:$0]  %s14_s8, 256, %s16_s10, [#allocation3]  }
   0x4   :  { %100 = dma.done.wait [#allocation3], 256  }
   0x5   :  { %101 = vsyncadd [#allocation3], 4294967040  ;;  %v23_v0 = vld [vmem:[#allocation2] sm:$0xff]  ;;  %v24_v1 = vld [vmem:[#allocation2 + $0x8] sm:$0xff]  ;;  %s105_s11 = smov [#allocation5]   ;;  %s38_s15 = sshll.u32 %s123_s1, 4  ;;  %s39_s15 = int_to_ptr.hbm [resolvable:$true] %s38_s15 }
   0x6   :  { %v25_v2 = vmul.f32 2.0, %v23_v0  ;;  %v26_v3 = vmul.f32 2.0, %v24_v1  ;;  %s36_s12 = sshll.u32 %s105_s11, 4  ;;  %s37_s12 = int_to_ptr.vmem [resolvable:$true] %s36_s12 }
   0x8   :  { %v48_v4 = vadd.f32 -1.0, %v25_v2  ;;  %v49_v5 = vadd.f32 -1.0, %v26_v3 }
   0xa   :  { %29 = vst [vmem:[#allocation5] sm:$0xff] %v48_v4 }
   0xb   :  { %30 = vst [vmem:[#allocation5 + $0x8] sm:$0xff] %v49_v5 }
   0xc   :  { %41 = dma.vmem_to_hbm [thread:$0]  %s37_s12, 256, %s39_s15, [#allocation4]  }
   0xd   :  { %102 = dma.done.wait [#allocation4], 256  }
   0xe   :  { %103 = vsyncadd [#allocation4], 4294967040 }
   0xf   :  { %46 = vsyncpa [#allocation3], 1 }
  0x10   :  { %47 = vsyncpa [#allocation4], 1 }

</bundles_post_ra>
